<compile_context>
chip_gen: v7x
topology: tpu7x:2x2x1
jax: 0.10.0
libtpu: 0.0.40
codegen_flags: <defaults>
</compile_context>

<pallas_src>
from functools import partial

import jax
import jax.numpy as jnp
from jax.experimental import pallas as pl
from jax.experimental.pallas import tpu as pltpu


def qnet_kernel(x_ref, w1_ref, b1_ref, w2_ref, b2_ref, o_ref):
    out_dim = o_ref.shape[1]

    # ---- Layer 1: (TB, 5) @ (5, 128) on the MXU (Mosaic pads K=5). -------
    h = jnp.dot(x_ref[...], w1_ref[...], preferred_element_type=jnp.float32)
    h = jnp.maximum(h + b1_ref[...], 0.0)                     # ReLU, (TB, 128)

    # ---- Layer 2: lane-dense (TB, 128) matmul kept in VMEM; only the -----
    # real out_dim columns go to HBM.
    y = jnp.dot(h, w2_ref[...], preferred_element_type=jnp.float32)
    y = y + b2_ref[...]
    o_ref[...] = y[:, :out_dim].astype(o_ref.dtype)


def pad_output_layer(w2, b2):
    """One-time prep: zero-pad the output projection to a lane-dense width."""
    hidden, out_dim = w2.shape
    out_pad = ((out_dim + 127) // 128) * 128
    w2p = jnp.zeros((hidden, out_pad), w2.dtype).at[:, :out_dim].set(w2)
    b2p = jnp.zeros((1, out_pad), b2.dtype).at[:, :out_dim].set(b2.reshape(1, -1))
    return w2p, b2p, out_dim


def _select_block_batch(batch, block_batch):
    rounded = max(8, ((batch + 7) // 8) * 8)
    if block_batch is None:
        desired = 2048
        if rounded > 16:
            # Keep >= 2 grid steps so v7x's two TensorCores both get work.
            desired = min(desired, ((pl.cdiv(rounded, 2) + 7) // 8) * 8)
        block_batch = min(desired, rounded)
    # Sublane rule: batch tile must be a multiple of 8.
    return max(8, ((block_batch + 7) // 8) * 8)


@partial(jax.jit, static_argnames=("out_dim", "block_batch"))
def qnetwork_forward(x, w1, b1, w2p, b2p, *, out_dim, block_batch=None):
    """x: (B, in_dim) float32.  w2p/b2p come from pad_output_layer.
    Returns (B, out_dim) float32."""
    batch, in_dim = x.shape
    hidden = w1.shape[1]
    out_pad = w2p.shape[1]
    assert w1.shape == (in_dim, hidden)
    assert b1.shape == (1, hidden)
    assert w2p.shape == (hidden, out_pad)
    assert b2p.shape == (1, out_pad)

    tb = _select_block_batch(batch, block_batch)
    padded_batch = pl.cdiv(batch, tb) * tb
    if padded_batch != batch:
        # Minor extra HBM traffic (x is only 20 B/row); fuses under jit.
        x = jnp.pad(x, ((0, padded_batch - batch), (0, 0)))
    grid = (padded_batch // tb,)

    out = pl.pallas_call(
        qnet_kernel,
        out_shape=jax.ShapeDtypeStruct((padded_batch, out_dim), jnp.float32),
        grid=grid,
        in_specs=[
            # Activations: streamed, one (TB, in_dim) block per grid step.
            pl.BlockSpec((tb, in_dim), lambda i: (i, 0)),
            # Weights / biases: whole arrays, resident across all steps.
            pl.BlockSpec((in_dim, hidden), lambda i: (0, 0)),
            pl.BlockSpec((1, hidden), lambda i: (0, 0)),
            pl.BlockSpec((hidden, out_pad), lambda i: (0, 0)),
            pl.BlockSpec((1, out_pad), lambda i: (0, 0)),
        ],
        # Last dim == full array dim (out_dim), so a non-128 block width is
        # legal; stores the narrow result directly (no padded writeback).
        out_specs=pl.BlockSpec((tb, out_dim), lambda i: (i, 0)),
        compiler_params=pltpu.CompilerParams(
            # Batch tiles are independent: shard across TCs on v7x megacore.
            dimension_semantics=("parallel",),
        ),
    )(x, w1, b1, w2p, b2p)

    return out[:batch] if padded_batch != batch else out


def init_params(key, in_dim=5, hidden=128, out_dim=4):
    """Deterministic init mimicking PyTorch Linear default:
    uniform(-1/sqrt(fan_in), 1/sqrt(fan_in))."""
    k1, k2, k3, k4 = jax.random.split(key, 4)
    bound1 = 1.0 / jnp.sqrt(in_dim)
    bound2 = 1.0 / jnp.sqrt(hidden)
    w1 = jax.random.uniform(k1, (in_dim, hidden), jnp.float32, -bound1, bound1)
    b1 = jax.random.uniform(k2, (1, hidden), jnp.float32, -bound1, bound1)
    w2 = jax.random.uniform(k3, (hidden, out_dim), jnp.float32, -bound2, bound2)
    b2 = jax.random.uniform(k4, (1, out_dim), jnp.float32, -bound2, bound2)
    return w1, b1, w2, b2


def _reference(x, w1, b1, w2, b2):
    return jnp.maximum(x @ w1 + b1, 0.0) @ w2 + b2


if __name__ == "__main__":
    key = jax.random.PRNGKey(0)
    k_params, k_x1, k_x2 = jax.random.split(key, 3)

    in_dim, hidden, out_dim = 5, 128, 4
    w1, b1, w2, b2 = init_params(k_params, in_dim, hidden, out_dim)
    w2p, b2p, out_dim = pad_output_layer(w2, b2)          # one-time prep

    # Small inference-style batch (single tile).
    x_small = jax.random.normal(k_x1, (8, in_dim), jnp.float32)
    out_small = jax.block_until_ready(
        qnetwork_forward(x_small, w1, b1, w2p, b2p, out_dim=out_dim)
    )
    ref_small = _reference(x_small, w1, b1, w2, b2)
    assert out_small.shape == (8, out_dim)
    assert jnp.allclose(out_small, ref_small, atol=1e-5, rtol=1e-5)

    # Larger, non-tile-multiple batch to exercise batch tiling + padding.
    x_big = jax.random.normal(k_x2, (200, in_dim), jnp.float32)
    out_big = jax.block_until_ready(
        qnetwork_forward(x_big, w1, b1, w2p, b2p, out_dim=out_dim, block_batch=64)
    )
    ref_big = _reference(x_big, w1, b1, w2, b2)
    assert out_big.shape == (200, out_dim)
    assert jnp.allclose(out_big, ref_big, atol=1e-5, rtol=1e-5)

    # Default (auto) tile selection on a mid-size batch.
    x_mid = jax.random.normal(k_x2, (2048, in_dim), jnp.float32)
    out_mid = jax.block_until_ready(
        qnetwork_forward(x_mid, w1, b1, w2p, b2p, out_dim=out_dim)
    )
    ref_mid = _reference(x_mid, w1, b1, w2, b2)
    assert out_mid.shape == (2048, out_dim)
    assert jnp.allclose(out_mid, ref_mid, atol=1e-5, rtol=1e-5)

    print("KERNEL_OK")
</pallas_src>

<mosaic_0001>
module attributes {stable_mosaic.version = 11 : i64} {
  func.func @qnet_kernel(%arg0: i32, %arg1: memref<8x5xf32, #tpu.memory_space<vmem>>, %arg2: memref<5x128xf32, #tpu.memory_space<vmem>>, %arg3: memref<1x128xf32, #tpu.memory_space<vmem>>, %arg4: memref<128x128xf32, #tpu.memory_space<vmem>>, %arg5: memref<1x128xf32, #tpu.memory_space<vmem>>, %arg6: memref<8x4xf32, #tpu.memory_space<vmem>>) attributes {dimension_semantics = [#tpu.dimension_semantics<parallel>], iteration_bounds = array<i64: 1>, scalar_prefetch = 0 : i64, scratch_operands = 0 : i64, tpu.core_type = #tpu.core_type<tc>, window_params = [{transform_indices = @transform_0, window_bounds = array<i64: 8, 5>}, {pipeline_mode = #tpu.pipeline_mode<synchronous>, transform_indices = @transform_1, window_bounds = array<i64: 5, 128>}, {pipeline_mode = #tpu.pipeline_mode<synchronous>, transform_indices = @transform_2, window_bounds = array<i64: 1, 128>}, {pipeline_mode = #tpu.pipeline_mode<synchronous>, transform_indices = @transform_3, window_bounds = array<i64: 128, 128>}, {pipeline_mode = #tpu.pipeline_mode<synchronous>, transform_indices = @transform_4, window_bounds = array<i64: 1, 128>}, {transform_indices = @transform_5, window_bounds = array<i64: 8, 4>}]} {
    %c0 = arith.constant 0 : index
    %c0_0 = arith.constant 0 : index
    %0 = vector.load %arg1[%c0, %c0_0] : memref<8x5xf32, #tpu.memory_space<vmem>>, vector<8x5xf32>
    %c0_1 = arith.constant 0 : index
    %c0_2 = arith.constant 0 : index
    %1 = vector.load %arg2[%c0_1, %c0_2] : memref<5x128xf32, #tpu.memory_space<vmem>>, vector<5x128xf32>
    %cst = arith.constant dense<0.000000e+00> : vector<8x128xf32>
    %2 = tpu.matmul %0, %1, %cst {dimension_numbers = #tpu.dot_dimension_numbers<[1], [0], [0], [1], [0, 0, 1, 1], [], []>} : vector<8x5xf32>, vector<5x128xf32>, vector<8x128xf32> -> vector<8x128xf32>
    %c0_3 = arith.constant 0 : index
    %c0_4 = arith.constant 0 : index
    %3 = vector.load %arg3[%c0_3, %c0_4] : memref<1x128xf32, #tpu.memory_space<vmem>>, vector<1x128xf32>
    %4 = vector.broadcast %3 : vector<1x128xf32> to vector<8x128xf32>
    %5 = arith.addf %2, %4 : vector<8x128xf32>
    %cst_5 = arith.constant 0.000000e+00 : f32
    %6 = vector.broadcast %cst_5 : f32 to vector<8x128xf32>
    %7 = arith.maximumf %5, %6 : vector<8x128xf32>
    %c0_6 = arith.constant 0 : index
    %c0_7 = arith.constant 0 : index
    %8 = vector.load %arg4[%c0_6, %c0_7] : memref<128x128xf32, #tpu.memory_space<vmem>>, vector<128x128xf32>
    %cst_8 = arith.constant dense<0.000000e+00> : vector<8x128xf32>
    %9 = tpu.matmul %7, %8, %cst_8 {dimension_numbers = #tpu.dot_dimension_numbers<[1], [0], [0], [1], [0, 0, 1, 1], [], []>} : vector<8x128xf32>, vector<128x128xf32>, vector<8x128xf32> -> vector<8x128xf32>
    %c0_9 = arith.constant 0 : index
    %c0_10 = arith.constant 0 : index
    %10 = vector.load %arg5[%c0_9, %c0_10] : memref<1x128xf32, #tpu.memory_space<vmem>>, vector<1x128xf32>
    %11 = vector.broadcast %10 : vector<1x128xf32> to vector<8x128xf32>
    %12 = arith.addf %9, %11 : vector<8x128xf32>
    %13 = vector.extract_strided_slice %12 {offsets = [0, 0], sizes = [8, 4], strides = [1, 1]} : vector<8x128xf32> to vector<8x4xf32>
    %c0_11 = arith.constant 0 : index
    %c0_12 = arith.constant 0 : index
    %14 = vector.load %arg6[%c0_11, %c0_12] : memref<8x4xf32, #tpu.memory_space<vmem>>, vector<8x4xf32>
    tpu.vector_store %arg6[%c0_11, %c0_12], %13 {strides = array<i32>} : memref<8x4xf32, #tpu.memory_space<vmem>>, vector<8x4xf32>,
    return
  }
  func.func @transform_0(%arg0: i32) -> (i32, i32) {
    %c0_i32 = arith.constant 0 : i32
    %c0_i32_0 = arith.constant 0 : i32
    return %arg0, %c0_i32 : i32, i32
  }
  func.func @transform_1(%arg0: i32) -> (i32, i32) {
    %c0_i32 = arith.constant 0 : i32
    %c0_i32_0 = arith.constant 0 : i32
    %c0_i32_1 = arith.constant 0 : i32
    return %c0_i32, %c0_i32_0 : i32, i32
  }
  func.func @transform_2(%arg0: i32) -> (i32, i32) {
    %c0_i32 = arith.constant 0 : i32
    %c0_i32_0 = arith.constant 0 : i32
    %c0_i32_1 = arith.constant 0 : i32
    return %c0_i32, %c0_i32_0 : i32, i32
  }
  func.func @transform_3(%arg0: i32) -> (i32, i32) {
    %c0_i32 = arith.constant 0 : i32
    %c0_i32_0 = arith.constant 0 : i32
    %c0_i32_1 = arith.constant 0 : i32
    return %c0_i32, %c0_i32_0 : i32, i32
  }
  func.func @transform_4(%arg0: i32) -> (i32, i32) {
    %c0_i32 = arith.constant 0 : i32
    %c0_i32_0 = arith.constant 0 : i32
    %c0_i32_1 = arith.constant 0 : i32
    return %c0_i32, %c0_i32_0 : i32, i32
  }
  func.func @transform_5(%arg0: i32) -> (i32, i32) {
    %c0_i32 = arith.constant 0 : i32
    %c0_i32_0 = arith.constant 0 : i32
    return %arg0, %c0_i32 : i32, i32
  }
}

</mosaic_0001>

<bundles_post_ra>
// kernel: qnetwork_forward.1
= control target key start
LH: loop header
LB: loop body
LE: loop exit
PB: predicated region body
PF: predicated region fallthrough
CT: control target
= control target key end

     0   :  { %10 = vsyncpa [#allocation3], 0  ;;  %s494_s0 = inlined_call_operand.hbm [shape: f32[8,5], index: 0, kind: input, shape index: {}]   ;;  %s495_s1 = inlined_call_operand.hbm [shape: f32[5,128], index: 1, kind: input, shape index: {}]   ;;  %s496_s2 = inlined_call_operand.vmem [shape: f32[1,128], index: 2, kind: input, shape index: {}]   ;;  %s497_s3 = inlined_call_operand.hbm [shape: f32[128,128], index: 3, kind: input, shape index: {}]   ;;  %s498_s4 = inlined_call_operand.vmem [shape: f32[1,128], index: 4, kind: input, shape index: {}]   ;;  %s499_s5 = inlined_call_operand.vmem [shape: f32[8,4], index: 5, kind: output, shape index: {}]  }
   0x1   :  { %11 = vsyncpa [#allocation5], 0  ;;  %s411_s18 = smov [#allocation4]   ;;  %s412_s20 = smov [#allocation2]  }
   0x2   :  { %s28_s19 = sshll.u32 %s411_s18, 4  ;;  %s18_s21 = sshll.u32 %s412_s20, 4  ;;  %s29_s19 = int_to_ptr.vmem [resolvable:$true] %s28_s19  ;;  %s19_s21 = int_to_ptr.vmem [resolvable:$true] %s18_s21 }
   0x3   :  { %s341_s24 = scalar_lea.hbm %s495_s1, 128 }
   0x4   :  { %p342_p0 = scmp.ne.s32.totalorder %s495_s1, %s341_s24  ;;  %p345_p1 = scmp.lt.u32.totalorder %s341_s24, %s495_s1 }
   0x6   :  { %p347_p2 = pnand %p345_p1, %p342_p0 }
   0x8   :  { %350 = shalt.err (!%p347_p2)
}
   0x9   :  { %s351_s29 = scalar_lea.vmem %s29_s19, 128  ;;  %p356_p4 = scmp.lt.s32.totalorder %s29_s19, %s29_s19 }
   0xa   :  { %p352_p3 = scmp.ne.s32.totalorder %s29_s19, %s351_s29  ;;  %p357_p5 = scmp.lt.s32.totalorder %s351_s29, %s351_s29 }
   0xc   :  { %p358_p6 = por %p357_p5, %p356_p4 }
   0xe   :  { %p359_p7 = pnand %p358_p6, %p352_p3 }
  0x10   :  { %362 = shalt.err (!%p359_p7)
}
  0x11   :  { %31 = dma.hbm_to_vmem [thread:$0]  %s495_s1, 128, %s29_s19, [#allocation5]  }
  0x12   :  { %s363_s9 = scalar_lea.hbm %s494_s0, 128 }
  0x13   :  { %p364_p8 = scmp.ne.s32.totalorder %s494_s0, %s363_s9  ;;  %p367_p9 = scmp.lt.u32.totalorder %s363_s9, %s494_s0 }
  0x15   :  { %p369_p10 = pnand %p367_p9, %p364_p8 }
  0x17   :  { %372 = shalt.err (!%p369_p10)
}
  0x18   :  { %s373_s14 = scalar_lea.vmem %s19_s21, 128  ;;  %p378_p12 = scmp.lt.s32.totalorder %s19_s21, %s19_s21 }
  0x19   :  { %p374_p11 = scmp.ne.s32.totalorder %s19_s21, %s373_s14  ;;  %p379_p13 = scmp.lt.s32.totalorder %s373_s14, %s373_s14 }
  0x1b   :  { %p380_p0 = por %p379_p13, %p378_p12 }
  0x1d   :  { %p381_p1 = pnand %p380_p0, %p374_p11 }
  0x1f   :  { %384 = shalt.err (!%p381_p1)
}
  0x20   :  { %21 = dma.hbm_to_vmem [thread:$0]  %s494_s0, 128, %s19_s21, [#allocation3]  }
  0x21   :  { %s413_s16 = smov [#allocation6]   ;;  %s385_s20 = scalar_lea.hbm %s497_s3, 2048 }
  0x22   :  { %s39_s17 = sshll.u32 %s413_s16, 4  ;;  %p386_p2 = scmp.ne.s32.totalorder %s497_s3, %s385_s20  ;;  %s40_s17 = int_to_ptr.vmem [resolvable:$true] %s39_s17 }
  0x23   :  { %p389_p3 = scmp.lt.u32.totalorder %s385_s20, %s497_s3 }
  0x25   :  { %p391_p4 = pnand %p389_p3, %p386_p2 }
  0x27   :  { %394 = shalt.err (!%p391_p4)
}
  0x28   :  { %s395_s26 = scalar_lea.vmem %s40_s17, 2048  ;;  %p400_p6 = scmp.lt.s32.totalorder %s40_s17, %s40_s17 }
  0x29   :  { %p396_p5 = scmp.ne.s32.totalorder %s40_s17, %s395_s26  ;;  %p401_p7 = scmp.lt.s32.totalorder %s395_s26, %s395_s26 }
  0x2b   :  { %p402_p8 = por %p401_p7, %p400_p6 }
  0x2d   :  { %p403_p9 = pnand %p402_p8, %p396_p5 }
  0x2f   :  { %406 = shalt.err (!%p403_p9)
}
  0x30   :  { %s414_s0 = smov 128   ;;  %s415_s21 = smov 8  }
  0x31   :  { %45 = dma.hbm_to_vmem [thread:$0]  %s497_s3, 2048, %s40_s17, [#allocation5], %s414_s0, %s414_s0, %s415_s21  }
  0x32   :  { %407 = dma.done.wait [#allocation3], 128  }
  0x33   :  { %408 = vsyncadd [#allocation3], 4294967168 }
  0x34   :  { %409 = dma.done.wait [#allocation5], 2176  }
  0x35   :  { %410 = vsyncadd [#allocation5], 4294965120  ;;  %v416_v0 = vmov 0.0   ;;  %vm417_vm0 = vmmov 0   ;;  %v418_v1 = vmov 0.0|0.0   ;;  %vm70_vm1 = vcmask 1044480  }
  0x36   :  { %269 = vmatprep.subr.mxu0 %v416_v0  ;;  %271 = vmatprep.mubr.msk.f32.mxu0 %vm417_vm0, %v416_v0  ;;  %vm66_vm2 = vcmask 39936   ;;  %v58_v2 = vld [vmem:[#allocation4] sm:$0x1f]  ;;  %v57_v3 = vld [vmem:[#allocation2] sm:$0xff]  ;;  %v145_v4 = vld [vmem:[#allocation6] sm:$0xff]  ;;  %vm238_vm3 = vcmask 31744  }
  0x37   :  { %309 = vmatprep.subr.bf16.mxu1 %v418_v1  ;;  %306 = vmatprep.mubr.msk.f32.mxu1 %vm417_vm0, %v416_v0  ;;  %v146_v5 = vld [vmem:[#allocation6 + $0x8] sm:$0xff]  ;;  %v147_v6 = vld [vmem:[#allocation6 + $0x10] sm:$0xff]  ;;  %v148_v7 = vld [vmem:[#allocation6 + $0x18] sm:$0xff] }
  0x38   :  { %270 = vmatpush3.msk.msra.mxu0 %vm70_vm1, %v58_v2  ;;  %v310_v8 = vpack.c.bf16 %v146_v5, %v145_v4  ;;  %v313_v9 = vpack.c.bf16 %v148_v7, %v147_v6  ;;  %v149_v10 = vld [vmem:[#allocation6 + $0x20] sm:$0xff]  ;;  %v150_v11 = vld [vmem:[#allocation6 + $0x28] sm:$0xff]  ;;  %v151_v13 = vld [vmem:[#allocation6 + $0x30] sm:$0xff] }
  0x39   :  { %272 = vmatmul.mubr.msk.f32.vlgmr.msra.gmra.mrb[0].mxu0 %vm66_vm2, %v57_v3  ;;  %v316_v12 = vpack.c.bf16 %v150_v11, %v149_v10  ;;  %v152_v14 = vld [vmem:[#allocation6 + $0x38] sm:$0xff]  ;;  %v153_v16 = vld [vmem:[#allocation6 + $0x40] sm:$0xff]  ;;  %v154_v17 = vld [vmem:[#allocation6 + $0x48] sm:$0xff] }
  0x3a   :  { %311 = vmatpush3.bf16.msra.mxu1 %v310_v8  ;;  %v319_v15 = vpack.c.bf16 %v152_v14, %v151_v13  ;;  %v322_v18 = vpack.c.bf16 %v154_v17, %v153_v16  ;;  %v155_v19 = vld [vmem:[#allocation6 + $0x50] sm:$0xff]  ;;  %v156_v20 = vld [vmem:[#allocation6 + $0x58] sm:$0xff]  ;;  %v157_v22 = vld [vmem:[#allocation6 + $0x60] sm:$0xff] }
  0x3b   :  { %312 = vmatprep.subr.bf16.mxu1 %v418_v1  ;;  %v325_v21 = vpack.c.bf16 %v156_v20, %v155_v19  ;;  %v158_v23 = vld [vmem:[#allocation6 + $0x68] sm:$0xff]  ;;  %v159_v25 = vld [vmem:[#allocation6 + $0x70] sm:$0xff]  ;;  %v160_v26 = vld [vmem:[#allocation6 + $0x78] sm:$0xff] }
  0x3c   :  { %v328_v24 = vpack.c.bf16 %v158_v23, %v157_v22  ;;  %v331_v27 = vpack.c.bf16 %v160_v26, %v159_v25  ;;  %v246_v28 = vld [vmem:[%s496_s2] ss:$0 sm:$0xff] }
  0x3d   :  { %v249_v33 = vld [vmem:[%s498_s4] ss:$0 sm:$0xff] }
  0x3e   :  { %314 = vmatpush3.bf16.msra.mxu1 %v313_v9 }
  0x3f   :  { %315 = vmatprep.subr.bf16.mxu1 %v418_v1 }
  0x42   :  { %317 = vmatpush3.bf16.msra.mxu1 %v316_v12 }
  0x43   :  { %318 = vmatprep.subr.bf16.mxu1 %v418_v1 }
  0x46   :  { %320 = vmatpush3.bf16.msra.mxu1 %v319_v15 }
  0x47   :  { %321 = vmatprep.subr.bf16.mxu1 %v418_v1 }
  0x4a   :  { %323 = vmatpush3.bf16.msra.mxu1 %v322_v18 }
  0x4b   :  { %324 = vmatprep.subr.bf16.mxu1 %v418_v1 }
  0x4e   :  { %326 = vmatpush3.bf16.msra.mxu1 %v325_v21 }
  0x4f   :  { %327 = vmatprep.subr.bf16.mxu1 %v418_v1 }
  0x52   :  { %329 = vmatpush3.bf16.msra.mxu1 %v328_v24 }
  0x53   :  { %330 = vmatprep.subr.bf16.mxu1 %v418_v1 }
  0x56   :  { %332 = vmatpush3.bf16.msra.mxu1 %v331_v27 }
 0x10c   :  { %v140_v29 = vpop.f32.mrb[0].mxu0 }
 0x10d   :  { %v141_v30 = vadd.f32 %v246_v28, %v140_v29  ;;  %v273_v31 = vpop.f32.mrb[1].mxu0 }
 0x10f   :  { %v144_v32 = vmax.f32 %v141_v30, 0.0 }
 0x111   :  { %307 = vmatmul.mubr.f32.vlgmr.msra.gmra.mrb[0].mxu1 %v144_v32 }
 0x1e4   :  { %v234_v34 = vpop.f32.mrb[0].mxu1 }
 0x1e5   :  { %v235_v35 = vadd.f32 %v249_v33, %v234_v34  ;;  %v308_v36 = vpop.f32.mrb[1].mxu1 }
 0x1e7   :  { %239 = vst.msk [vmem:[%s499_s5] sm:$0xff] %vm238_vm3, %v235_v35 }
 0x1e8   :  { %244 = vsyncpa [#allocation3], 1 }
 0x1e9   :  { %245 = vsyncpa [#allocation5], 1 }

</bundles_post_ra>
